<compile_context>
chip_gen: v6e
topology: v6e:2x2x1
jax: 0.10.0
libtpu: 0.0.40
codegen_flags: <defaults>
</compile_context>

<pallas_src>
import functools

import jax
import jax.numpy as jnp
import numpy as np
from jax.experimental import pallas as pl
from jax.experimental.pallas import tpu as pltpu


def _round_up(x, m):
    return (x + m - 1) // m * m


# ---------------------------------------------------------------------------
# Tiled GEMM kernel:  out = act(x @ w + b)
# ---------------------------------------------------------------------------
def _gemm_kernel(x_ref, w_ref, b_ref, o_ref, acc_ref, *, relu):
    @pl.when(pl.program_id(2) == 0)
    def _init():
        acc_ref[...] = jnp.zeros_like(acc_ref)

    acc_ref[...] += jnp.dot(
        x_ref[...].astype(jnp.float32),
        w_ref[...].astype(jnp.float32),
        preferred_element_type=jnp.float32,
    )

    @pl.when(pl.program_id(2) == pl.num_programs(2) - 1)
    def _finalize():
        r = acc_ref[...] + b_ref[...].astype(jnp.float32)
        if relu:
            r = jnp.maximum(r, 0.0)
        o_ref[...] = r.astype(o_ref.dtype)


def linear_pallas(x, w, b, *, relu=False, tm=256, tn=256, tk=512,
                  out_dtype=jnp.float32):
    """act(x @ w + b) via a tiled Pallas GEMM.  x:(M,K)  w:(K,N)  b:(N,)."""
    M, K = x.shape
    K2, N = w.shape
    assert K == K2 and b.shape == (N,)

    # Adaptive tiling: use the whole dim if it is small, otherwise pad it up to
    # a multiple of the target tile (zero padding is exact for a matmul).
    tm_, Mp = (M, M) if M <= tm else (tm, _round_up(M, tm))
    tk_, Kp = (K, K) if K <= tk else (tk, _round_up(K, tk))
    tn_, Np = (N, N) if N <= tn else (tn, _round_up(N, tn))

    xp = x if (Mp == M and Kp == K) else jnp.pad(x, ((0, Mp - M), (0, Kp - K)))
    wp = w if (Kp == K and Np == N) else jnp.pad(w, ((0, Kp - K), (0, Np - N)))
    bp = (b if Np == N else jnp.pad(b, (0, Np - N))).reshape(1, Np)

    grid = (Mp // tm_, Np // tn_, Kp // tk_)

    out = pl.pallas_call(
        functools.partial(_gemm_kernel, relu=relu),
        out_shape=jax.ShapeDtypeStruct((Mp, Np), out_dtype),
        grid=grid,
        in_specs=[
            pl.BlockSpec((tm_, tk_), lambda i, j, k: (i, k)),
            pl.BlockSpec((tk_, tn_), lambda i, j, k: (k, j)),
            pl.BlockSpec((1, tn_), lambda i, j, k: (0, j)),
        ],
        out_specs=pl.BlockSpec((tm_, tn_), lambda i, j, k: (i, j)),
        scratch_shapes=[pltpu.VMEM((tm_, tn_), jnp.float32)],
        compiler_params=pltpu.CompilerParams(
            dimension_semantics=("parallel", "parallel", "arbitrary")),
        cost_estimate=pl.CostEstimate(
            flops=2 * Mp * Np * Kp,
            transcendentals=0,
            bytes_accessed=(Mp * Kp + Kp * Np + Mp * Np) * 4),
    )(xp, wp, bp)

    if Mp != M or Np != N:
        out = out[:M, :N]
    return out


# ---------------------------------------------------------------------------
# Conv2d(C -> Cout, k=3, s=2, p=1) + ReLU  as  im2col (data movement) + GEMM
# ---------------------------------------------------------------------------
def _im2col(x_nhwc, ksize=3, stride=2, pad=1):
    B, H, W, C = x_nhwc.shape
    xp = jnp.pad(x_nhwc, ((0, 0), (pad, pad), (pad, pad), (0, 0)))
    OH = (H + 2 * pad - ksize) // stride + 1
    OW = (W + 2 * pad - ksize) // stride + 1
    cols = []
    for kh in range(ksize):
        for kw in range(ksize):
            cols.append(xp[:, kh:kh + stride * OH:stride,
                           kw:kw + stride * OW:stride, :])
    col = jnp.concatenate(cols, axis=-1)            # (B, OH, OW, k*k*C)
    return col.reshape(B * OH * OW, ksize * ksize * C), OH, OW


def conv3x3_s2_relu(x_nhwc, w_col, b):
    """w_col: (9*C_in, C_out) laid out as (kh, kw, c_in) rows."""
    B = x_nhwc.shape[0]
    col, OH, OW = _im2col(x_nhwc)
    y = linear_pallas(col, w_col, b, relu=True)
    return y.reshape(B, OH, OW, w_col.shape[1])


# ---------------------------------------------------------------------------
# Reparametrization kernel:  z = mu + eps * exp(0.5 * logvar)
# ---------------------------------------------------------------------------
def _reparam_kernel(mu_ref, logvar_ref, eps_ref, z_ref):
    mu = mu_ref[...].astype(jnp.float32)
    lv = logvar_ref[...].astype(jnp.float32)
    eps = eps_ref[...].astype(jnp.float32)
    z_ref[...] = (mu + eps * jnp.exp(0.5 * lv)).astype(z_ref.dtype)


def reparametrize_pallas(mu, logvar, eps):
    return pl.pallas_call(
        _reparam_kernel,
        out_shape=jax.ShapeDtypeStruct(mu.shape, mu.dtype),
        in_specs=[pl.BlockSpec(memory_space=pltpu.MemorySpace.VMEM)] * 3,
        out_specs=pl.BlockSpec(memory_space=pltpu.MemorySpace.VMEM),
    )(mu, logvar, eps)


# ---------------------------------------------------------------------------
# Encoder parameters + forward
# ---------------------------------------------------------------------------
def init_encoder_params(key, in_ch, in_hw, n_conv_layers, nz,
                        dtype=jnp.float32):
    params = {"conv": []}
    ch, hw = in_ch, in_hw
    keys = jax.random.split(key, n_conv_layers + 2)
    for l in range(n_conv_layers):
        out_ch = ch * 4                      # 'down' stage: C -> 4C, HW -> HW/2
        fan_in = 9 * ch
        w = jax.random.normal(keys[l], (fan_in, out_ch), dtype) / np.sqrt(fan_in)
        b = jnp.zeros((out_ch,), dtype)
        params["conv"].append((w, b))
        ch, hw = out_ch, hw // 2
    flat = ch * hw * hw
    # fc_mu and fc_var fused into one GEMM: output columns [mu | logvar].
    w_mu = jax.random.normal(keys[-2], (flat, nz), dtype) / np.sqrt(flat)
    w_var = jax.random.normal(keys[-1], (flat, nz), dtype) / np.sqrt(flat)
    params["fc_w"] = jnp.concatenate([w_mu, w_var], axis=1)      # (flat, 2*nz)
    params["fc_b"] = jnp.zeros((2 * nz,), dtype)
    params["meta"] = (ch, hw, flat, nz)
    return params


def encoder_forward(params, x_nchw, eps):
    """x: (B, C, H, W) -> (z, mu, logvar), each (B, nz)."""
    B = x_nchw.shape[0]
    _, _, flat, nz = params["meta"]
    h = jnp.transpose(x_nchw, (0, 2, 3, 1))          # NHWC for im2col
    for (w, b) in params["conv"]:
        h = conv3x3_s2_relu(h, w, b)
    # match torch nn.Flatten() on an NCHW tensor
    h = jnp.transpose(h, (0, 3, 1, 2)).reshape(B, flat)
    head = linear_pallas(h, params["fc_w"], params["fc_b"], relu=False)
    mu, logvar = head[:, :nz], head[:, nz:]
    z = reparametrize_pallas(mu, logvar, eps)
    return z, mu, logvar


# ---------------------------------------------------------------------------
if __name__ == "__main__":
    B, IN_CH, IN_HW, NLAYERS, NZ = 2, 4, 16, 2, 32

    key = jax.random.PRNGKey(0)
    k_param, k_x, k_eps = jax.random.split(key, 3)

    params = init_encoder_params(k_param, IN_CH, IN_HW, NLAYERS, NZ)
    x = jax.random.normal(k_x, (B, IN_CH, IN_HW, IN_HW), jnp.float32)
    eps = jax.random.normal(k_eps, (B, NZ), jnp.float32)

    z, mu, logvar = encoder_forward(params, x, eps)
    z = jax.block_until_ready(z)
    mu = jax.block_until_ready(mu)
    logvar = jax.block_until_ready(logvar)

    # Pure-JAX reference (high-precision dots) for a correctness check.
    def _ref_dot(a, b):
        return jnp.dot(a, b, precision=jax.lax.Precision.HIGHEST)

    def ref_forward(params, x, eps):
        h = jnp.transpose(x, (0, 2, 3, 1))
        for (w, b) in params["conv"]:
            col, OH, OW = _im2col(h)
            y = jnp.maximum(_ref_dot(col, w) + b, 0.0)
            h = y.reshape(x.shape[0], OH, OW, w.shape[1])
        nz = params["meta"][3]
        h = jnp.transpose(h, (0, 3, 1, 2)).reshape(x.shape[0], -1)
        head = _ref_dot(h, params["fc_w"]) + params["fc_b"]
        mu_r, lv_r = head[:, :nz], head[:, nz:]
        z_r = mu_r + eps * jnp.exp(0.5 * lv_r)
        return z_r, mu_r, lv_r

    z_r, mu_r, lv_r = ref_forward(params, x, eps)
    np.testing.assert_allclose(np.asarray(mu), np.asarray(mu_r),
                               rtol=2e-2, atol=2e-2)
    np.testing.assert_allclose(np.asarray(logvar), np.asarray(lv_r),
                               rtol=2e-2, atol=2e-2)
    np.testing.assert_allclose(np.asarray(z), np.asarray(z_r),
                               rtol=2e-2, atol=2e-2)

    print("KERNEL_OK")
</pallas_src>

<mosaic_0001>
module attributes {stable_mosaic.version = 11 : i64} {
  func.func @_gemm_kernel(%arg0: i32, %arg1: i32, %arg2: i32, %arg3: memref<128x36xf32, #tpu.memory_space<vmem>>, %arg4: memref<36x16xf32, #tpu.memory_space<vmem>>, %arg5: memref<1x16xf32, #tpu.memory_space<vmem>>, %arg6: memref<128x16xf32, #tpu.memory_space<vmem>>, %arg7: memref<128x16xf32, #tpu.memory_space<vmem>>) attributes {dimension_semantics = [#tpu.dimension_semantics<parallel>, #tpu.dimension_semantics<parallel>, #tpu.dimension_semantics<arbitrary>], iteration_bounds = array<i64: 1, 1, 1>, scalar_prefetch = 0 : i64, scratch_operands = 1 : i64, tpu.core_type = #tpu.core_type<tc>, window_params = [{transform_indices = @transform_0, window_bounds = array<i64: 128, 36>}, {transform_indices = @transform_1, window_bounds = array<i64: 36, 16>}, {transform_indices = @transform_2, window_bounds = array<i64: 1, 16>}, {transform_indices = @transform_3, window_bounds = array<i64: 128, 16>}]} {
    %c0_i32 = arith.constant 0 : i32
    %0 = arith.cmpi eq, %arg2, %c0_i32 : i32
    %1 = arith.extui %0 : i1 to i32
    %c0_i32_0 = arith.constant 0 : i32
    %2 = arith.cmpi ne, %1, %c0_i32_0 : i32
    scf.if %2 {
      %cst_10 = arith.constant 0.000000e+00 : f32
      %12 = vector.broadcast %cst_10 : f32 to vector<128x16xf32>
      %c0_11 = arith.constant 0 : index
      %c0_12 = arith.constant 0 : index
      %13 = vector.load %arg7[%c0_11, %c0_12] : memref<128x16xf32, #tpu.memory_space<vmem>>, vector<128x16xf32>
      tpu.vector_store %arg7[%c0_11, %c0_12], %12 {strides = array<i32>} : memref<128x16xf32, #tpu.memory_space<vmem>>, vector<128x16xf32>,
    } else {
    }
    %c0 = arith.constant 0 : index
    %c0_1 = arith.constant 0 : index
    %3 = vector.load %arg7[%c0, %c0_1] : memref<128x16xf32, #tpu.memory_space<vmem>>, vector<128x16xf32>
    %c0_2 = arith.constant 0 : index
    %c0_3 = arith.constant 0 : index
    %4 = vector.load %arg3[%c0_2, %c0_3] : memref<128x36xf32, #tpu.memory_space<vmem>>, vector<128x36xf32>
    %c0_4 = arith.constant 0 : index
    %c0_5 = arith.constant 0 : index
    %5 = vector.load %arg4[%c0_4, %c0_5] : memref<36x16xf32, #tpu.memory_space<vmem>>, vector<36x16xf32>
    %cst = arith.constant dense<0.000000e+00> : vector<128x16xf32>
    %6 = tpu.matmul %4, %5, %cst {dimension_numbers = #tpu.dot_dimension_numbers<[1], [0], [0], [1], [0, 0, 1, 1], [], []>} : vector<128x36xf32>, vector<36x16xf32>, vector<128x16xf32> -> vector<128x16xf32>
    %7 = arith.addf %3, %6 : vector<128x16xf32>
    %c0_6 = arith.constant 0 : index
    %c0_7 = arith.constant 0 : index
    %8 = vector.load %arg7[%c0_6, %c0_7] : memref<128x16xf32, #tpu.memory_space<vmem>>, vector<128x16xf32>
    tpu.vector_store %arg7[%c0_6, %c0_7], %7 {strides = array<i32>} : memref<128x16xf32, #tpu.memory_space<vmem>>, vector<128x16xf32>,
    %c0_i32_8 = arith.constant 0 : i32
    %9 = arith.cmpi eq, %arg2, %c0_i32_8 : i32
    %10 = arith.extui %9 : i1 to i32
    %c0_i32_9 = arith.constant 0 : i32
    %11 = arith.cmpi ne, %10, %c0_i32_9 : i32
    scf.if %11 {
      %c0_10 = arith.constant 0 : index
      %c0_11 = arith.constant 0 : index
      %12 = vector.load %arg7[%c0_10, %c0_11] : memref<128x16xf32, #tpu.memory_space<vmem>>, vector<128x16xf32>
      %c0_12 = arith.constant 0 : index
      %c0_13 = arith.constant 0 : index
      %13 = vector.load %arg5[%c0_12, %c0_13] : memref<1x16xf32, #tpu.memory_space<vmem>>, vector<1x16xf32>
      %14 = vector.broadcast %13 : vector<1x16xf32> to vector<128x16xf32>
      %15 = arith.addf %12, %14 : vector<128x16xf32>
      %cst_14 = arith.constant 0.000000e+00 : f32
      %16 = vector.broadcast %cst_14 : f32 to vector<128x16xf32>
      %17 = arith.maximumf %15, %16 : vector<128x16xf32>
      %c0_15 = arith.constant 0 : index
      %c0_16 = arith.constant 0 : index
      %18 = vector.load %arg6[%c0_15, %c0_16] : memref<128x16xf32, #tpu.memory_space<vmem>>, vector<128x16xf32>
      tpu.vector_store %arg6[%c0_15, %c0_16], %17 {strides = array<i32>} : memref<128x16xf32, #tpu.memory_space<vmem>>, vector<128x16xf32>,
    } else {
    }
    return
  }
  func.func @transform_0(%arg0: i32, %arg1: i32, %arg2: i32) -> (i32, i32) {
    %c0_i32 = arith.constant 0 : i32
    return %arg0, %arg2 : i32, i32
  }
  func.func @transform_1(%arg0: i32, %arg1: i32, %arg2: i32) -> (i32, i32) {
    %c0_i32 = arith.constant 0 : i32
    return %arg2, %arg1 : i32, i32
  }
  func.func @transform_2(%arg0: i32, %arg1: i32, %arg2: i32) -> (i32, i32) {
    %c0_i32 = arith.constant 0 : i32
    %c0_i32_0 = arith.constant 0 : i32
    return %c0_i32, %arg1 : i32, i32
  }
  func.func @transform_3(%arg0: i32, %arg1: i32, %arg2: i32) -> (i32, i32) {
    %c0_i32 = arith.constant 0 : i32
    return %arg0, %arg1 : i32, i32
  }
}

</mosaic_0001>

<bundles_post_ra>
// kernel: tpu_custom_call.1
= control target key start
LH: loop header
LB: loop body
LE: loop exit
PB: predicated region body
PF: predicated region fallthrough
CT: control target
= control target key end

     0   :  { %vm121_vm0 = vcmask 1043456   ;;  %vm18_vm1 = vcmask 130048   ;;  %v465_v2 = vmov 0.0   ;;  %vm72_vm2 = vcmask 293888   ;;  %s686_s1 = inlined_call_operand.vmem [shape: f32[36,16], index: 1, kind: input, shape index: {}]   ;;  %s687_s0 = inlined_call_operand.vmem [shape: f32[128,36], index: 0, kind: input, shape index: {}]   ;;  %s688_s2 = inlined_call_operand.vmem [shape: f32[1,16], index: 2, kind: input, shape index: {}]   ;;  %s689_s3 = inlined_call_operand.vmem [shape: f32[128,16], index: 3, kind: output, shape index: {}]  }
   0x1   :  { %v71_v0 = vld [vmem:[%s686_s1 + $0x20] sm:$0xf]  ;;  %v70_v1 = vld [vmem:[%s686_s1 + $0x18] sm:$0xff]  ;;  %20 = vst.msk [vmem:[#allocation2 + $0x8] sm:$0xff] %vm18_vm1, %v465_v2  ;;  %19 = vst.msk [vmem:[#allocation2] sm:$0xff] %vm18_vm1, %v465_v2 }
   0x2   :  { %21 = vst.msk [vmem:[#allocation2 + $0x10] sm:$0xff] %vm18_vm1, %v465_v2  ;;  %22 = vst.msk [vmem:[#allocation2 + $0x18] sm:$0xff] %vm18_vm1, %v465_v2  ;;  %420 = vmatprep.subr.msk.mxu0 %vm121_vm0, %v71_v0  ;;  %454 = vmatprep.subr.msk.mxu1 %vm121_vm0, %v71_v0  ;;  %v69_v3 = vld [vmem:[%s686_s1 + $0x10] sm:$0xff]  ;;  %v68_v4 = vld [vmem:[%s686_s1 + $0x8] sm:$0xff] }
   0x3   :  { %23 = vst.msk [vmem:[#allocation2 + $0x20] sm:$0xff] %vm18_vm1, %v465_v2  ;;  %24 = vst.msk [vmem:[#allocation2 + $0x28] sm:$0xff] %vm18_vm1, %v465_v2  ;;  %421 = vmatpush3.msk.msra.mxu0 %vm121_vm0, %v71_v0  ;;  %459 = vmatpush3.msk.msra.mxu1 %vm121_vm0, %v71_v0  ;;  %v67_v5 = vld [vmem:[%s686_s1] sm:$0xff]  ;;  %v52_v8 = vld [vmem:[%s687_s0 + $0x8] sm:$0xff] }
   0x4   :  { %25 = vst.msk [vmem:[#allocation2 + $0x30] sm:$0xff] %vm18_vm1, %v465_v2  ;;  %26 = vst.msk [vmem:[#allocation2 + $0x38] sm:$0xff] %vm18_vm1, %v465_v2  ;;  %422 = vmatprep.subr.mxu0 %v70_v1  ;;  %455 = vmatprep.subr.mxu1 %v70_v1  ;;  %v51_v6 = vld [vmem:[%s687_s0] sm:$0xff]  ;;  %v60_v9 = vld [vmem:[%s687_s0 + $0x48] sm:$0xff] }
   0x5   :  { %27 = vst.msk [vmem:[#allocation2 + $0x40] sm:$0xff] %vm18_vm1, %v465_v2  ;;  %28 = vst.msk [vmem:[#allocation2 + $0x48] sm:$0xff] %vm18_vm1, %v465_v2  ;;  %423 = vmatpush3.msra.mxu0 %v70_v1  ;;  %460 = vmatpush3.msra.mxu1 %v70_v1  ;;  %v59_v7 = vld [vmem:[%s687_s0 + $0x40] sm:$0xff]  ;;  %v53_v10 = vld [vmem:[%s687_s0 + $0x10] sm:$0xff] }
   0x6   :  { %29 = vst.msk [vmem:[#allocation2 + $0x50] sm:$0xff] %vm18_vm1, %v465_v2  ;;  %30 = vst.msk [vmem:[#allocation2 + $0x58] sm:$0xff] %vm18_vm1, %v465_v2  ;;  %424 = vmatprep.subr.mxu0 %v69_v3  ;;  %456 = vmatprep.subr.mxu1 %v69_v3  ;;  %v61_v11 = vld [vmem:[%s687_s0 + $0x50] sm:$0xff]  ;;  %v54_v12 = vld [vmem:[%s687_s0 + $0x18] sm:$0xff] }
   0x7   :  { %31 = vst.msk [vmem:[#allocation2 + $0x60] sm:$0xff] %vm18_vm1, %v465_v2  ;;  %32 = vst.msk [vmem:[#allocation2 + $0x68] sm:$0xff] %vm18_vm1, %v465_v2  ;;  %425 = vmatpush3.msra.mxu0 %v69_v3  ;;  %461 = vmatpush3.msra.mxu1 %v69_v3  ;;  %v62_v13 = vld [vmem:[%s687_s0 + $0x58] sm:$0xff]  ;;  %v55_v14 = vld [vmem:[%s687_s0 + $0x20] sm:$0xff] }
   0x8   :  { %33 = vst.msk [vmem:[#allocation2 + $0x70] sm:$0xff] %vm18_vm1, %v465_v2  ;;  %34 = vst.msk [vmem:[#allocation2 + $0x78] sm:$0xff] %vm18_vm1, %v465_v2  ;;  %426 = vmatprep.subr.mxu0 %v68_v4  ;;  %457 = vmatprep.subr.mxu1 %v68_v4  ;;  %v63_v15 = vld [vmem:[%s687_s0 + $0x60] sm:$0xff]  ;;  %v56_v16 = vld [vmem:[%s687_s0 + $0x28] sm:$0xff] }
   0x9   :  { %427 = vmatpush3.msra.mxu0 %v68_v4  ;;  %462 = vmatpush3.msra.mxu1 %v68_v4  ;;  %v64_v17 = vld [vmem:[%s687_s0 + $0x68] sm:$0xff]  ;;  %v57_v18 = vld [vmem:[%s687_s0 + $0x30] sm:$0xff]  ;;  %v58_v20 = vld [vmem:[%s687_s0 + $0x38] sm:$0xff] }
   0xa   :  { %428 = vmatprep.subr.mxu0 %v67_v5  ;;  %458 = vmatprep.subr.mxu1 %v67_v5  ;;  %v65_v19 = vld [vmem:[%s687_s0 + $0x70] sm:$0xff]  ;;  %v66_v21 = vld [vmem:[%s687_s0 + $0x78] sm:$0xff]  ;;  %v36_v22 = vld [vmem:[#allocation2 + $0x8] sm:$0xff] }
   0xb   :  { %429 = vmatpush3.msra.mxu0 %v67_v5  ;;  %463 = vmatpush3.msra.mxu1 %v67_v5  ;;  %v35_v26 = vld [vmem:[#allocation2] sm:$0xff]  ;;  %v38_v32 = vld [vmem:[#allocation2 + $0x18] sm:$0xff]  ;;  %v37_v38 = vld [vmem:[#allocation2 + $0x10] sm:$0xff] }
   0xc   :  { %430 = vmatprep.mubr.msk.f32.mxu0 %vm72_vm2, %v51_v6  ;;  %442 = vmatprep.mubr.msk.f32.mxu1 %vm72_vm2, %v59_v7  ;;  %v44_v23 = vld [vmem:[#allocation2 + $0x48] sm:$0xff]  ;;  %v43_v27 = vld [vmem:[#allocation2 + $0x40] sm:$0xff]  ;;  %v42_v63 = vld [vmem:[#allocation2 + $0x38] sm:$0xff] }
   0xd   :  { %431 = vmatmul.mubr.msk.f32.vlgmr.msra.gmra.mxu0 %vm72_vm2, %v52_v8  ;;  %443 = vmatmul.mubr.msk.f32.vlgmr.msra.gmra.mxu1 %vm72_vm2, %v60_v9  ;;  %v46_v33 = vld [vmem:[#allocation2 + $0x58] sm:$0xff]  ;;  %v45_v39 = vld [vmem:[#allocation2 + $0x50] sm:$0xff]  ;;  %v40_v44 = vld [vmem:[#allocation2 + $0x28] sm:$0xff] }
   0xe   :  { %433 = vmatprep.mubr.msk.f32.mxu0 %vm72_vm2, %v53_v10  ;;  %445 = vmatprep.mubr.msk.f32.mxu1 %vm72_vm2, %v61_v11  ;;  %v48_v45 = vld [vmem:[#allocation2 + $0x68] sm:$0xff]  ;;  %v594_v48 = vld [vmem:[%s688_s2] ss:$0 sm:$0xff]  ;;  %v41_v9 = vld [vmem:[#allocation2 + $0x30] sm:$0xff] }
   0xf   :  { %v39_v51 = vld [vmem:[#allocation2 + $0x20] sm:$0xff]  ;;  %v50_v0 = vld [vmem:[#allocation2 + $0x78] sm:$0xff]  ;;  %v49_v10 = vld [vmem:[#allocation2 + $0x70] sm:$0xff] }
  0x10   :  { %v47_v52 = vld [vmem:[#allocation2 + $0x60] sm:$0xff] }
  0x11   :  { %434 = vmatmul.mubr.msk.f32.gmra.mxu0 %vm72_vm2, %v54_v12  ;;  %446 = vmatmul.mubr.msk.f32.gmra.mxu1 %vm72_vm2, %v62_v13 }
  0x12   :  { %436 = vmatprep.mubr.msk.f32.mxu0 %vm72_vm2, %v55_v14  ;;  %448 = vmatprep.mubr.msk.f32.mxu1 %vm72_vm2, %v63_v15 }
  0x15   :  { %437 = vmatmul.mubr.msk.f32.gmra.mxu0 %vm72_vm2, %v56_v16  ;;  %449 = vmatmul.mubr.msk.f32.gmra.mxu1 %vm72_vm2, %v64_v17 }
  0x16   :  { %439 = vmatprep.mubr.msk.f32.mxu0 %vm72_vm2, %v57_v18  ;;  %451 = vmatprep.mubr.msk.f32.mxu1 %vm72_vm2, %v65_v19 }
  0x19   :  { %440 = vmatmul.mubr.msk.f32.gmra.mxu0 %vm72_vm2, %v58_v20  ;;  %452 = vmatmul.mubr.msk.f32.gmra.mxu1 %vm72_vm2, %v66_v21 }
  0xcd   :  { %v432_v24 = vpop.f32.mrf.mxu0  ;;  %v444_v25 = vpop.f32.mrf.mxu1 }
  0xce   :  { %v271_v28 = vadd.f32 %v432_v24, %v36_v22  ;;  %v279_v29 = vadd.f32 %v444_v25, %v44_v23 }
  0xcf   :  { %v191_v30 = vpop.f32.mrf.mxu0  ;;  %v231_v31 = vpop.f32.mrf.mxu1 }
  0xd0   :  { %288 = vst.msk [vmem:[#allocation2 + $0x8] sm:$0xff] %vm18_vm1, %v271_v28  ;;  %296 = vst.msk [vmem:[#allocation2 + $0x48] sm:$0xff] %vm18_vm1, %v279_v29  ;;  %v270_v34 = vadd.f32 %v191_v30, %v35_v26  ;;  %v278_v35 = vadd.f32 %v231_v31, %v43_v27 }
  0xd1   :  { %v435_v36 = vpop.f32.mrf.mxu0  ;;  %v447_v37 = vpop.f32.mrf.mxu1 }
  0xd2   :  { %287 = vst.msk [vmem:[#allocation2] sm:$0xff] %vm18_vm1, %v270_v34  ;;  %295 = vst.msk [vmem:[#allocation2 + $0x40] sm:$0xff] %vm18_vm1, %v278_v35  ;;  %v273_v40 = vadd.f32 %v435_v36, %v38_v32  ;;  %v281_v41 = vadd.f32 %v447_v37, %v46_v33 }
  0xd3   :  { %v201_v42 = vpop.f32.mrf.mxu0  ;;  %v241_v43 = vpop.f32.mrf.mxu1 }
  0xd4   :  { %290 = vst.msk [vmem:[#allocation2 + $0x18] sm:$0xff] %vm18_vm1, %v273_v40  ;;  %298 = vst.msk [vmem:[#allocation2 + $0x58] sm:$0xff] %vm18_vm1, %v281_v41  ;;  %v272_v46 = vadd.f32 %v201_v42, %v37_v38  ;;  %v280_v47 = vadd.f32 %v241_v43, %v45_v39 }
  0xd5   :  { %v438_v49 = vpop.f32.mrf.mxu0  ;;  %v450_v50 = vpop.f32.mrf.mxu1 }
  0xd6   :  { %289 = vst.msk [vmem:[#allocation2 + $0x10] sm:$0xff] %vm18_vm1, %v272_v46  ;;  %297 = vst.msk [vmem:[#allocation2 + $0x50] sm:$0xff] %vm18_vm1, %v280_v47  ;;  %v275_v53 = vadd.f32 %v438_v49, %v40_v44  ;;  %v283_v54 = vadd.f32 %v450_v50, %v48_v45 }
  0xd7   :  { %v307_v55 = vld [vmem:[#allocation2 + $0x8] sm:$0xff]  ;;  %v211_v57 = vpop.f32.mrf.mxu0  ;;  %v251_v58 = vpop.f32.mrf.mxu1 }
  0xd8   :  { %v315_v56 = vld [vmem:[#allocation2 + $0x48] sm:$0xff]  ;;  %v330_v59 = vadd.f32 %v594_v48, %v307_v55  ;;  %292 = vst.msk [vmem:[#allocation2 + $0x28] sm:$0xff] %vm18_vm1, %v275_v53  ;;  %300 = vst.msk [vmem:[#allocation2 + $0x68] sm:$0xff] %vm18_vm1, %v283_v54  ;;  %v274_v61 = vadd.f32 %v211_v57, %v39_v51  ;;  %v282_v62 = vadd.f32 %v251_v58, %v47_v52 }
  0xd9   :  { %v338_v60 = vadd.f32 %v594_v48, %v315_v56  ;;  %v306_v1 = vld [vmem:[#allocation2] sm:$0xff]  ;;  %v441_v3 = vpop.f32.mrf.mxu0  ;;  %v453_v4 = vpop.f32.mrf.mxu1 }
  0xda   :  { %v314_v2 = vld [vmem:[#allocation2 + $0x40] sm:$0xff]  ;;  %v346_v5 = vmax.f32 %v330_v59, 0.0  ;;  %v329_v7 = vadd.f32 %v594_v48, %v306_v1  ;;  %291 = vst.msk [vmem:[#allocation2 + $0x20] sm:$0xff] %vm18_vm1, %v274_v61  ;;  %299 = vst.msk [vmem:[#allocation2 + $0x60] sm:$0xff] %vm18_vm1, %v282_v62  ;;  %v277_v13 = vadd.f32 %v441_v3, %v42_v63  ;;  %v285_v14 = vadd.f32 %v453_v4, %v50_v0 }
  0xdb   :  { %v354_v6 = vmax.f32 %v338_v60, 0.0  ;;  %v337_v8 = vadd.f32 %v594_v48, %v314_v2  ;;  %v309_v11 = vld [vmem:[#allocation2 + $0x18] sm:$0xff]  ;;  %v221_v15 = vpop.f32.mrf.mxu0  ;;  %v261_v16 = vpop.f32.mrf.mxu1 }
  0xdc   :  { %v317_v12 = vld [vmem:[#allocation2 + $0x58] sm:$0xff]  ;;  %362 = vst.msk [vmem:[%s689_s3 + $0x8] sm:$0xff] %vm18_vm1, %v346_v5  ;;  %v345_v17 = vmax.f32 %v329_v7, 0.0  ;;  %v332_v19 = vadd.f32 %v594_v48, %v309_v11  ;;  %294 = vst.msk [vmem:[#allocation2 + $0x38] sm:$0xff] %vm18_vm1, %v277_v13  ;;  %v276_v23 = vadd.f32 %v221_v15, %v41_v9  ;;  %v284_v24 = vadd.f32 %v261_v16, %v49_v10 }
  0xdd   :  { %370 = vst.msk [vmem:[%s689_s3 + $0x48] sm:$0xff] %vm18_vm1, %v354_v6  ;;  %v353_v18 = vmax.f32 %v337_v8, 0.0  ;;  %v340_v20 = vadd.f32 %v594_v48, %v317_v12  ;;  %v308_v21 = vld [vmem:[#allocation2 + $0x10] sm:$0xff]  ;;  %302 = vst.msk [vmem:[#allocation2 + $0x78] sm:$0xff] %vm18_vm1, %v285_v14 }
  0xde   :  { %v316_v22 = vld [vmem:[#allocation2 + $0x50] sm:$0xff]  ;;  %361 = vst.msk [vmem:[%s689_s3] sm:$0xff] %vm18_vm1, %v345_v17  ;;  %v348_v25 = vmax.f32 %v332_v19, 0.0  ;;  %v331_v27 = vadd.f32 %v594_v48, %v308_v21  ;;  %293 = vst.msk [vmem:[#allocation2 + $0x30] sm:$0xff] %vm18_vm1, %v276_v23 }
  0xdf   :  { %369 = vst.msk [vmem:[%s689_s3 + $0x40] sm:$0xff] %vm18_vm1, %v353_v18  ;;  %v356_v26 = vmax.f32 %v340_v20, 0.0  ;;  %v339_v28 = vadd.f32 %v594_v48, %v316_v22  ;;  %v311_v29 = vld [vmem:[#allocation2 + $0x28] sm:$0xff]  ;;  %301 = vst.msk [vmem:[#allocation2 + $0x70] sm:$0xff] %vm18_vm1, %v284_v24 }
  0xe0   :  { %v319_v30 = vld [vmem:[#allocation2 + $0x68] sm:$0xff]  ;;  %364 = vst.msk [vmem:[%s689_s3 + $0x18] sm:$0xff] %vm18_vm1, %v348_v25  ;;  %v347_v31 = vmax.f32 %v331_v27, 0.0  ;;  %v334_v33 = vadd.f32 %v594_v48, %v311_v29 }
  0xe1   :  { %372 = vst.msk [vmem:[%s689_s3 + $0x58] sm:$0xff] %vm18_vm1, %v356_v26  ;;  %v355_v32 = vmax.f32 %v339_v28, 0.0  ;;  %v342_v34 = vadd.f32 %v594_v48, %v319_v30  ;;  %v310_v35 = vld [vmem:[#allocation2 + $0x20] sm:$0xff] }
  0xe2   :  { %v318_v36 = vld [vmem:[#allocation2 + $0x60] sm:$0xff]  ;;  %363 = vst.msk [vmem:[%s689_s3 + $0x10] sm:$0xff] %vm18_vm1, %v347_v31  ;;  %v350_v37 = vmax.f32 %v334_v33, 0.0  ;;  %v333_v39 = vadd.f32 %v594_v48, %v310_v35 }
  0xe3   :  { %371 = vst.msk [vmem:[%s689_s3 + $0x50] sm:$0xff] %vm18_vm1, %v355_v32  ;;  %v358_v38 = vmax.f32 %v342_v34, 0.0  ;;  %v341_v40 = vadd.f32 %v594_v48, %v318_v36  ;;  %v313_v43 = vld [vmem:[#allocation2 + $0x38] sm:$0xff] }
  0xe4   :  { %366 = vst.msk [vmem:[%s689_s3 + $0x28] sm:$0xff] %vm18_vm1, %v350_v37  ;;  %v349_v41 = vmax.f32 %v333_v39, 0.0  ;;  %v321_v44 = vld [vmem:[#allocation2 + $0x78] sm:$0xff]  ;;  %v336_v45 = vadd.f32 %v594_v48, %v313_v43 }
  0xe5   :  { %374 = vst.msk [vmem:[%s689_s3 + $0x68] sm:$0xff] %vm18_vm1, %v358_v38  ;;  %v357_v42 = vmax.f32 %v341_v40, 0.0  ;;  %v344_v46 = vadd.f32 %v594_v48, %v321_v44  ;;  %v312_v47 = vld [vmem:[#allocation2 + $0x30] sm:$0xff] }
  0xe6   :  { %365 = vst.msk [vmem:[%s689_s3 + $0x20] sm:$0xff] %vm18_vm1, %v349_v41  ;;  %v320_v49 = vld [vmem:[#allocation2 + $0x70] sm:$0xff]  ;;  %v352_v50 = vmax.f32 %v336_v45, 0.0  ;;  %v335_v52 = vadd.f32 %v594_v48, %v312_v47 }
  0xe7   :  { %373 = vst.msk [vmem:[%s689_s3 + $0x60] sm:$0xff] %vm18_vm1, %v357_v42  ;;  %v360_v51 = vmax.f32 %v344_v46, 0.0  ;;  %v343_v53 = vadd.f32 %v594_v48, %v320_v49 }
  0xe8   :  { %368 = vst.msk [vmem:[%s689_s3 + $0x38] sm:$0xff] %vm18_vm1, %v352_v50  ;;  %v351_v54 = vmax.f32 %v335_v52, 0.0 }
  0xe9   :  { %376 = vst.msk [vmem:[%s689_s3 + $0x78] sm:$0xff] %vm18_vm1, %v360_v51  ;;  %v359_v55 = vmax.f32 %v343_v53, 0.0 }
  0xea   :  { %367 = vst.msk [vmem:[%s689_s3 + $0x30] sm:$0xff] %vm18_vm1, %v351_v54 }
  0xeb   :  { %375 = vst.msk [vmem:[%s689_s3 + $0x70] sm:$0xff] %vm18_vm1, %v359_v55 }

</bundles_post_ra>
